<compile_context>
chip_gen: v6e
topology: v6e:2x2x1
jax: 0.10.0
libtpu: 0.0.40
codegen_flags: <defaults>
</compile_context>

<pallas_src>
import functools

import numpy as np
import jax
import jax.numpy as jnp
from jax import lax
from jax.experimental import pallas as pl
from jax.experimental.pallas import tpu as pltpu


CONFIG = dict(
    response_embedding_size=8,
    embedding_size=16,
    hidden_size=32,
    max_elapsed_seconds=300,
    max_lag_minutes=1440,
    max_position_embeddings=32,
    layer_norm_eps=1e-12,
    bn_eps=1e-5,
    hidden_dropout_prob=0.1,
)


def _round_up(x, m):
    return ((x + m - 1) // m) * m


# ----------------------------- Pallas kernel ------------------------------- #
def _decoder_emb_kernel(tok_ref, t_resp_ref, t_lag_ref, t_el_ref, t_pos_ref,
                        const_ref, out_ref, *, max_elapsed, ln_eps):
    tok = tok_ref[...]                              # (4, TM) f32 packed stream
    resp_id = tok[0:1, :].astype(jnp.int32)         # ids are small ints, exact in f32
    pos_id = tok[1:2, :].astype(jnp.int32)
    lag = tok[2:3, :]                               # (1, TM) clipped lag minutes
    el = tok[3:4, :]                                # (1, TM) raw elapsed seconds

    consts = const_ref[...]                         # (H, 5)
    w0 = consts[:, 0:1]
    w1 = consts[:, 1:2]
    bias = consts[:, 2:3]
    gamma = consts[:, 3:4]
    beta = consts[:, 4:5]

    # ---- numerical branch: BN(2) + Linear(2->E) + its Linear block, folded ----
    lag_log = jnp.log(1.0 + lag)
    el_num = jnp.clip(el, 0.0, float(max_elapsed))
    h = w0 * lag_log + w1 * el_num + bias           # (H, TM)

    # ---- categorical bins ----
    lag_cat = jnp.where(lag < 6.0, lag.astype(jnp.int32),
                        ((lag - 1.0) / 10.0).astype(jnp.int32) + 6)
    el_cat = jnp.clip(el.astype(jnp.int32) + 1, 0, max_elapsed)

    # ---- range-restricted one-hots: 4 small accumulated MXU matmuls ----
    def add_onehot_matmul(acc, tab, idx):
        k = tab.shape[1]
        iota = lax.broadcasted_iota(jnp.int32, (k, 1), 0)     # tiny iota column
        oh = (iota == idx).astype(jnp.float32)                # (k, TM)
        return acc + jnp.dot(tab, oh, preferred_element_type=jnp.float32)

    h = add_onehot_matmul(h, t_resp_ref[...], resp_id)
    h = add_onehot_matmul(h, t_lag_ref[...], lag_cat)
    h = add_onehot_matmul(h, t_el_ref[...], el_cat)
    h = add_onehot_matmul(h, t_pos_ref[...], pos_id)

    # ---- LayerNorm over the feature (sublane) axis ----
    mu = jnp.mean(h, axis=0, keepdims=True)
    var = jnp.mean((h - mu) ** 2, axis=0, keepdims=True)
    out_ref[...] = (h - mu) * lax.rsqrt(var + ln_eps) * gamma + beta


# ------------------------------ plain-JAX glue ------------------------------ #
def get_lag_time(timestamp, max_lag_minutes):
    # torch.unique_consecutive over the flattened tensor, expressed with cumsum.
    b, s = timestamp.shape
    ts = timestamp.reshape(-1)
    change = jnp.concatenate(
        [jnp.zeros((1,), jnp.int32), (ts[1:] != ts[:-1]).astype(jnp.int32)])
    inv = jnp.cumsum(change)                                      # run index / element
    unique_time = jnp.zeros((b * s,), ts.dtype).at[inv].set(ts)   # run -> its value
    inv2 = inv.reshape(b, s)
    first = jnp.min(inv2, axis=1, keepdims=True)
    idx = jnp.maximum(first, inv2 - 1)
    lag = (timestamp - unique_time[idx]).astype(jnp.float32) / (1000.0 * 60.0)
    return jnp.clip(lag, 0.0, float(max_lag_minutes))


def init_params(key, cfg):
    r, e, h = cfg["response_embedding_size"], cfg["embedding_size"], cfg["hidden_size"]
    v_el = cfg["max_elapsed_seconds"] + 2
    v_lag = int(cfg["max_lag_minutes"] / 10) + 7
    v_pos = cfg["max_position_embeddings"]
    din = r + 4 * e
    ks = jax.random.split(key, 8)
    resp_tab = jax.random.normal(ks[0], (4, r), jnp.float32).at[0].set(0.0)     # padding_idx=0
    el_tab = jax.random.normal(ks[1], (v_el, e), jnp.float32).at[0].set(0.0)    # padding_idx=0
    lag_tab = jax.random.normal(ks[2], (v_lag, e), jnp.float32).at[0].set(0.0)  # padding_idx=0
    pos_tab = jax.random.normal(ks[3], (v_pos, e), jnp.float32)
    w_num = jax.random.normal(ks[4], (e, 2), jnp.float32) * 0.3    # torch Linear: (out, in)
    b_num = jax.random.normal(ks[5], (e,), jnp.float32) * 0.1
    w_lin = jax.random.normal(ks[6], (h, din), jnp.float32) * (1.0 / np.sqrt(din))
    b_lin = jax.random.normal(ks[7], (h,), jnp.float32) * 0.1
    return dict(resp_tab=resp_tab, el_tab=el_tab, lag_tab=lag_tab, pos_tab=pos_tab,
                w_num=w_num, b_num=b_num, w_lin=w_lin, b_lin=b_lin,
                bn_w=jnp.ones((2,), jnp.float32), bn_b=jnp.zeros((2,), jnp.float32),
                ln_g=jnp.ones((h,), jnp.float32), ln_b=jnp.zeros((h,), jnp.float32))


def decoder_embeddings(params, cfg, input_ids, position_ids, timestamp,
                       elapsed_time, tm=1024, return_hn=False):
    b, s = input_ids.shape
    r, e, h = cfg["response_embedding_size"], cfg["embedding_size"], cfg["hidden_size"]
    max_el = cfg["max_elapsed_seconds"]
    v_el = max_el + 2
    v_lag = int(cfg["max_lag_minutes"] / 10) + 7
    v_pos = cfg["max_position_embeddings"]

    # -- glue: lag-time prep + fold training-mode BatchNorm into Linear(2->E) --
    lag = get_lag_time(timestamp, cfg["max_lag_minutes"])          # (B, S) f32
    el_clip = jnp.clip(elapsed_time, 0.0, float(max_el))
    x_num = jnp.stack([jnp.log(1.0 + lag), el_clip], axis=-1)      # (B, S, 2)
    mean = jnp.mean(x_num, axis=(0, 1))
    var = jnp.var(x_num, axis=(0, 1))                              # biased, like BN
    a = params["bn_w"] / jnp.sqrt(var + cfg["bn_eps"])
    c = params["bn_b"] - mean * a
    w1_eff = params["w_num"] * a[None, :]                          # (E, 2)
    b1_eff = params["b_num"] + params["w_num"] @ c                 # (E,)

    # -- fold the Linear(Din->H) blocks into the tables / numerical weights / bias --
    w_lin_t = params["w_lin"].T                                    # (Din, H)
    w_r = w_lin_t[:r]
    w_n = w_lin_t[r:r + e]
    w_l = w_lin_t[r + e:r + 2 * e]
    w_e = w_lin_t[r + 2 * e:r + 3 * e]
    w_p = w_lin_t[r + 3 * e:]

    def folded_table(tab, w):
        t = jnp.asarray((tab @ w).T, jnp.float32)                  # (H, K)
        k_pad = _round_up(t.shape[1], 8)                           # sublane-aligned K
        return jnp.pad(t, ((0, 0), (0, k_pad - t.shape[1])))

    t_resp = folded_table(params["resp_tab"], w_r)                 # (H, 8)
    t_lag = folded_table(params["lag_tab"], w_l)                   # (H, 152)
    t_el = folded_table(params["el_tab"], w_e)                     # (H, 304)
    t_pos = folded_table(params["pos_tab"], w_p)                   # (H, 32)

    w_num_k = (w1_eff.T @ w_n).T                                   # (H, 2)
    bias_k = b1_eff @ w_n + params["b_lin"]                        # (H,)
    consts = jnp.stack([w_num_k[:, 0], w_num_k[:, 1], bias_k,
                        params["ln_g"], params["ln_b"]], axis=1)   # (H, 5)
    consts = jnp.asarray(consts, jnp.float32)

    # -- flatten tokens onto the lane axis, pad to a multiple of the tile size --
    n = b * s
    tm = max(128, _round_up(tm, 128))
    tm_eff = min(tm, _round_up(n, 8))       # tiny inputs: don't over-pad
    n_pad = _round_up(n, tm_eff)
    pad = n_pad - n
    # NOTE (v7x megacore): for production N prefer tm such that n_pad//tm >= 2
    # so the "parallel" token axis can be split across the two TensorCores.

    tok = jnp.stack([input_ids.reshape(-1).astype(jnp.float32),
                     position_ids.reshape(-1).astype(jnp.float32),
                     lag.reshape(-1).astype(jnp.float32),
                     elapsed_time.reshape(-1).astype(jnp.float32)], axis=0)
    tok = jnp.pad(tok, ((0, 0), (0, pad)))                         # (4, N_pad)

    tok_spec = pl.BlockSpec((4, tm_eff), lambda i: (0, i))
    full = lambda arr: pl.BlockSpec(arr.shape, lambda i: (0, 0))   # resident constants

    kern = functools.partial(_decoder_emb_kernel, max_elapsed=max_el,
                             ln_eps=cfg["layer_norm_eps"])

    k_tot = t_resp.shape[1] + t_lag.shape[1] + t_el.shape[1] + t_pos.shape[1]
    cost = pl.CostEstimate(
        flops=int(2 * n_pad * k_tot * h + 24 * n_pad * h),
        transcendentals=int(2 * n_pad),
        bytes_accessed=int(4 * (4 * n_pad + h * n_pad + h * (k_tot + 5))),
    )

    out = pl.pallas_call(
        kern,
        out_shape=jax.ShapeDtypeStruct((h, n_pad), jnp.float32),
        grid=(n_pad // tm_eff,),
        in_specs=[tok_spec, full(t_resp), full(t_lag), full(t_el), full(t_pos),
                  full(consts)],
        out_specs=pl.BlockSpec((h, tm_eff), lambda i: (0, i)),
        compiler_params=pltpu.CompilerParams(
            dimension_semantics=("parallel",),
            vmem_limit_bytes=32 * 1024 * 1024),
        cost_estimate=cost,
    )(tok, t_resp, t_lag, t_el, t_pos, consts)

    # TODO(synk): Dropout omitted (eval-mode identity); PyTorch's stochastic
    # training-mode mask has no deterministic equivalent here.
    if return_hn:
        return out[:, :n]            # lane-dense (H, N); skips the HBM transpose
    return out[:, :n].T.reshape(b, s, h)


# ------------------------- pure-JAX reference check ------------------------- #
def reference(params, cfg, input_ids, position_ids, timestamp, elapsed_time):
    max_el = cfg["max_elapsed_seconds"]
    lag = get_lag_time(timestamp, cfg["max_lag_minutes"])
    el_num = jnp.clip(elapsed_time, 0.0, float(max_el))
    x = jnp.stack([jnp.log(1.0 + lag), el_num], axis=-1)
    mean = jnp.mean(x, axis=(0, 1))
    var = jnp.var(x, axis=(0, 1))
    xn = (x - mean) / jnp.sqrt(var + cfg["bn_eps"]) * params["bn_w"] + params["bn_b"]
    num_emb = xn @ params["w_num"].T + params["b_num"]
    resp_emb = params["resp_tab"][input_ids]
    lag_cat = jnp.where(lag < 6.0, lag.astype(jnp.int32),
                        ((lag - 1.0) / 10.0).astype(jnp.int32) + 6)
    lag_emb = params["lag_tab"][lag_cat]
    el_cat = jnp.clip(elapsed_time.astype(jnp.int32) + 1, 0, max_el)
    el_emb = params["el_tab"][el_cat]
    pos_emb = params["pos_tab"][position_ids]
    cat = jnp.concatenate([resp_emb, num_emb, lag_emb, el_emb, pos_emb], axis=-1)
    h = cat @ params["w_lin"].T + params["b_lin"]
    mu = jnp.mean(h, axis=-1, keepdims=True)
    v = jnp.mean((h - mu) ** 2, axis=-1, keepdims=True)
    return (h - mu) / jnp.sqrt(v + cfg["layer_norm_eps"]) * params["ln_g"] + params["ln_b"]


if __name__ == "__main__":
    cfg = CONFIG
    B, S = 2, 8
    key = jax.random.PRNGKey(0)
    kp, k1, k2, k3 = jax.random.split(key, 4)
    params = init_params(kp, cfg)

    input_ids = jax.random.randint(k1, (B, S), 0, 4, dtype=jnp.int32)
    position_ids = jnp.broadcast_to(jnp.arange(S, dtype=jnp.int32), (B, S))
    # timestamps in milliseconds with consecutive repeats (exercises unique_consecutive)
    steps = jax.random.randint(k2, (B, S), 0, 3, dtype=jnp.int32) * 60_000
    timestamp = jnp.cumsum(steps, axis=1) + (
        jnp.arange(B, dtype=jnp.int32)[:, None] * 10_000_000)
    elapsed_time = jax.random.uniform(k3, (B, S), jnp.float32, 0.0, 400.0)

    out = decoder_embeddings(params, cfg, input_ids, position_ids, timestamp,
                             elapsed_time)
    out = jax.block_until_ready(out)

    ref = reference(params, cfg, input_ids, position_ids, timestamp, elapsed_time)
    np.testing.assert_allclose(np.asarray(out), np.asarray(ref), rtol=1e-3, atol=1e-3)
    print("KERNEL_OK")
</pallas_src>

<mosaic_0001>
module attributes {stable_mosaic.version = 11 : i64} {
  func.func @_decoder_emb_kernel(%arg0: i32, %arg1: memref<4x16xf32, #tpu.memory_space<vmem>>, %arg2: memref<32x8xf32, #tpu.memory_space<vmem>>, %arg3: memref<32x152xf32, #tpu.memory_space<vmem>>, %arg4: memref<32x304xf32, #tpu.memory_space<vmem>>, %arg5: memref<32x32xf32, #tpu.memory_space<vmem>>, %arg6: memref<32x5xf32, #tpu.memory_space<vmem>>, %arg7: memref<32x16xf32, #tpu.memory_space<vmem>>) attributes {dimension_semantics = [#tpu.dimension_semantics<parallel>], iteration_bounds = array<i64: 1>, scalar_prefetch = 0 : i64, scratch_operands = 0 : i64, tpu.core_type = #tpu.core_type<tc>, window_params = [{transform_indices = @transform_0, window_bounds = array<i64: 4, 16>}, {pipeline_mode = #tpu.pipeline_mode<synchronous>, transform_indices = @transform_1, window_bounds = array<i64: 32, 8>}, {pipeline_mode = #tpu.pipeline_mode<synchronous>, transform_indices = @transform_2, window_bounds = array<i64: 32, 152>}, {pipeline_mode = #tpu.pipeline_mode<synchronous>, transform_indices = @transform_3, window_bounds = array<i64: 32, 304>}, {pipeline_mode = #tpu.pipeline_mode<synchronous>, transform_indices = @transform_4, window_bounds = array<i64: 32, 32>}, {pipeline_mode = #tpu.pipeline_mode<synchronous>, transform_indices = @transform_5, window_bounds = array<i64: 32, 5>}, {transform_indices = @transform_6, window_bounds = array<i64: 32, 16>}]} {
    %c0 = arith.constant 0 : index
    %c0_0 = arith.constant 0 : index
    %0 = vector.load %arg1[%c0, %c0_0] : memref<4x16xf32, #tpu.memory_space<vmem>>, vector<4x16xf32>
    %1 = vector.extract_strided_slice %0 {offsets = [0, 0], sizes = [1, 16], strides = [1, 1]} : vector<4x16xf32> to vector<1x16xf32>
    %2 = arith.fptosi %1 : vector<1x16xf32> to vector<1x16xi32>
    %3 = vector.extract_strided_slice %0 {offsets = [1, 0], sizes = [1, 16], strides = [1, 1]} : vector<4x16xf32> to vector<1x16xf32>
    %4 = arith.fptosi %3 : vector<1x16xf32> to vector<1x16xi32>
    %5 = vector.extract_strided_slice %0 {offsets = [2, 0], sizes = [1, 16], strides = [1, 1]} : vector<4x16xf32> to vector<1x16xf32>
    %6 = vector.extract_strided_slice %0 {offsets = [3, 0], sizes = [1, 16], strides = [1, 1]} : vector<4x16xf32> to vector<1x16xf32>
    %c0_1 = arith.constant 0 : index
    %c0_2 = arith.constant 0 : index
    %7 = vector.load %arg6[%c0_1, %c0_2] : memref<32x5xf32, #tpu.memory_space<vmem>>, vector<32x5xf32>
    %8 = vector.extract_strided_slice %7 {offsets = [0, 0], sizes = [32, 1], strides = [1, 1]} : vector<32x5xf32> to vector<32x1xf32>
    %9 = vector.extract_strided_slice %7 {offsets = [0, 1], sizes = [32, 1], strides = [1, 1]} : vector<32x5xf32> to vector<32x1xf32>
    %10 = vector.extract_strided_slice %7 {offsets = [0, 2], sizes = [32, 1], strides = [1, 1]} : vector<32x5xf32> to vector<32x1xf32>
    %11 = vector.extract_strided_slice %7 {offsets = [0, 3], sizes = [32, 1], strides = [1, 1]} : vector<32x5xf32> to vector<32x1xf32>
    %12 = vector.extract_strided_slice %7 {offsets = [0, 4], sizes = [32, 1], strides = [1, 1]} : vector<32x5xf32> to vector<32x1xf32>
    %cst = arith.constant 1.000000e+00 : f32
    %13 = vector.broadcast %cst : f32 to vector<1x16xf32>
    %14 = arith.addf %13, %5 : vector<1x16xf32>
    %15 = math.log %14 : vector<1x16xf32>
    %cst_3 = arith.constant 0.000000e+00 : f32
    %cst_4 = arith.constant 3.000000e+02 : f32
    %16 = vector.broadcast %cst_3 : f32 to vector<1x16xf32>
    %17 = arith.maximumf %16, %6 : vector<1x16xf32>
    %18 = vector.broadcast %cst_4 : f32 to vector<1x16xf32>
    %19 = arith.minimumf %18, %17 : vector<1x16xf32>
    %20 = vector.broadcast %8 : vector<32x1xf32> to vector<32x16xf32>
    %21 = vector.broadcast %15 : vector<1x16xf32> to vector<32x16xf32>
    %22 = arith.mulf %20, %21 : vector<32x16xf32>
    %23 = vector.broadcast %9 : vector<32x1xf32> to vector<32x16xf32>
    %24 = vector.broadcast %19 : vector<1x16xf32> to vector<32x16xf32>
    %25 = arith.mulf %23, %24 : vector<32x16xf32>
    %26 = arith.addf %22, %25 : vector<32x16xf32>
    %27 = vector.broadcast %10 : vector<32x1xf32> to vector<32x16xf32>
    %28 = arith.addf %26, %27 : vector<32x16xf32>
    %cst_5 = arith.constant 6.000000e+00 : f32
    %29 = vector.broadcast %cst_5 : f32 to vector<1x16xf32>
    %30 = arith.cmpf olt, %5, %29 : vector<1x16xf32>
    %31 = arith.fptosi %5 : vector<1x16xf32> to vector<1x16xi32>
    %cst_6 = arith.constant 1.000000e+00 : f32
    %32 = vector.broadcast %cst_6 : f32 to vector<1x16xf32>
    %33 = arith.subf %5, %32 : vector<1x16xf32>
    %cst_7 = arith.constant 1.000000e+01 : f32
    %34 = vector.broadcast %cst_7 : f32 to vector<1x16xf32>
    %35 = arith.divf %33, %34 : vector<1x16xf32>
    %36 = arith.fptosi %35 : vector<1x16xf32> to vector<1x16xi32>
    %c6_i32 = arith.constant 6 : i32
    %37 = vector.broadcast %c6_i32 : i32 to vector<1x16xi32>
    %38 = arith.addi %36, %37 : vector<1x16xi32>
    %39 = arith.select %30, %31, %38 : vector<1x16xi1>, vector<1x16xi32>
    %40 = arith.fptosi %6 : vector<1x16xf32> to vector<1x16xi32>
    %c1_i32 = arith.constant 1 : i32
    %41 = vector.broadcast %c1_i32 : i32 to vector<1x16xi32>
    %42 = arith.addi %40, %41 : vector<1x16xi32>
    %c0_i32 = arith.constant 0 : i32
    %c300_i32 = arith.constant 300 : i32
    %43 = vector.broadcast %c0_i32 : i32 to vector<1x16xi32>
    %44 = arith.maxsi %43, %42 : vector<1x16xi32>
    %45 = vector.broadcast %c300_i32 : i32 to vector<1x16xi32>
    %46 = arith.minsi %45, %44 : vector<1x16xi32>
    %c0_8 = arith.constant 0 : index
    %c0_9 = arith.constant 0 : index
    %47 = vector.load %arg2[%c0_8, %c0_9] : memref<32x8xf32, #tpu.memory_space<vmem>>, vector<32x8xf32>
    %48 = tpu.iota {dimensions = array<i32: 0>} : vector<8x1xi32>
    %49 = vector.broadcast %48 : vector<8x1xi32> to vector<8x16xi32>
    %50 = vector.broadcast %2 : vector<1x16xi32> to vector<8x16xi32>
    %51 = arith.cmpi eq, %49, %50 : vector<8x16xi32>
    %52 = arith.extui %51 : vector<8x16xi1> to vector<8x16xi32>
    %53 = arith.sitofp %52 : vector<8x16xi32> to vector<8x16xf32>
    %cst_10 = arith.constant dense<0.000000e+00> : vector<32x16xf32>
    %54 = tpu.matmul %47, %53, %cst_10 {dimension_numbers = #tpu.dot_dimension_numbers<[1], [0], [0], [1], [0, 0, 1, 1], [], []>} : vector<32x8xf32>, vector<8x16xf32>, vector<32x16xf32> -> vector<32x16xf32>
    %55 = arith.addf %28, %54 : vector<32x16xf32>
    %c0_11 = arith.constant 0 : index
    %c0_12 = arith.constant 0 : index
    %56 = vector.load %arg3[%c0_11, %c0_12] : memref<32x152xf32, #tpu.memory_space<vmem>>, vector<32x152xf32>
    %57 = tpu.iota {dimensions = array<i32: 0>} : vector<152x1xi32>
    %58 = vector.broadcast %57 : vector<152x1xi32> to vector<152x16xi32>
    %59 = vector.broadcast %39 : vector<1x16xi32> to vector<152x16xi32>
    %60 = arith.cmpi eq, %58, %59 : vector<152x16xi32>
    %61 = arith.extui %60 : vector<152x16xi1> to vector<152x16xi32>
    %62 = arith.sitofp %61 : vector<152x16xi32> to vector<152x16xf32>
    %cst_13 = arith.constant dense<0.000000e+00> : vector<32x16xf32>
    %63 = tpu.matmul %56, %62, %cst_13 {dimension_numbers = #tpu.dot_dimension_numbers<[1], [0], [0], [1], [0, 0, 1, 1], [], []>} : vector<32x152xf32>, vector<152x16xf32>, vector<32x16xf32> -> vector<32x16xf32>
    %64 = arith.addf %55, %63 : vector<32x16xf32>
    %c0_14 = arith.constant 0 : index
    %c0_15 = arith.constant 0 : index
    %65 = vector.load %arg4[%c0_14, %c0_15] : memref<32x304xf32, #tpu.memory_space<vmem>>, vector<32x304xf32>
    %66 = tpu.iota {dimensions = array<i32: 0>} : vector<304x1xi32>
    %67 = vector.broadcast %66 : vector<304x1xi32> to vector<304x16xi32>
    %68 = vector.broadcast %46 : vector<1x16xi32> to vector<304x16xi32>
    %69 = arith.cmpi eq, %67, %68 : vector<304x16xi32>
    %70 = arith.extui %69 : vector<304x16xi1> to vector<304x16xi32>
    %71 = arith.sitofp %70 : vector<304x16xi32> to vector<304x16xf32>
    %cst_16 = arith.constant dense<0.000000e+00> : vector<32x16xf32>
    %72 = tpu.matmul %65, %71, %cst_16 {dimension_numbers = #tpu.dot_dimension_numbers<[1], [0], [0], [1], [0, 0, 1, 1], [], []>} : vector<32x304xf32>, vector<304x16xf32>, vector<32x16xf32> -> vector<32x16xf32>
    %73 = arith.addf %64, %72 : vector<32x16xf32>
    %c0_17 = arith.constant 0 : index
    %c0_18 = arith.constant 0 : index
    %74 = vector.load %arg5[%c0_17, %c0_18] : memref<32x32xf32, #tpu.memory_space<vmem>>, vector<32x32xf32>
    %75 = tpu.iota {dimensions = array<i32: 0>} : vector<32x1xi32>
    %76 = vector.broadcast %75 : vector<32x1xi32> to vector<32x16xi32>
    %77 = vector.broadcast %4 : vector<1x16xi32> to vector<32x16xi32>
    %78 = arith.cmpi eq, %76, %77 : vector<32x16xi32>
    %79 = arith.extui %78 : vector<32x16xi1> to vector<32x16xi32>
    %80 = arith.sitofp %79 : vector<32x16xi32> to vector<32x16xf32>
    %cst_19 = arith.constant dense<0.000000e+00> : vector<32x16xf32>
    %81 = tpu.matmul %74, %80, %cst_19 {dimension_numbers = #tpu.dot_dimension_numbers<[1], [0], [0], [1], [0, 0, 1, 1], [], []>} : vector<32x32xf32>, vector<32x16xf32>, vector<32x16xf32> -> vector<32x16xf32>
    %82 = arith.addf %73, %81 : vector<32x16xf32>
    %cst_20 = arith.constant dense<0.000000e+00> : vector<16xf32>
    %83 = vector.multi_reduction <add>, %82, %cst_20 [0] : vector<32x16xf32> to vector<16xf32>
    %84 = vector.shape_cast %83 : vector<16xf32> to vector<1x16xf32>
    %cst_21 = arith.constant 3.200000e+01 : f32
    %85 = vector.broadcast %cst_21 : f32 to vector<1x16xf32>
    %86 = arith.divf %84, %85 : vector<1x16xf32>
    %87 = vector.broadcast %86 : vector<1x16xf32> to vector<32x16xf32>
    %88 = arith.subf %82, %87 : vector<32x16xf32>
    %89 = arith.mulf %88, %88 : vector<32x16xf32>
    %cst_22 = arith.constant dense<0.000000e+00> : vector<16xf32>
    %90 = vector.multi_reduction <add>, %89, %cst_22 [0] : vector<32x16xf32> to vector<16xf32>
    %91 = vector.shape_cast %90 : vector<16xf32> to vector<1x16xf32>
    %cst_23 = arith.constant 3.200000e+01 : f32
    %92 = vector.broadcast %cst_23 : f32 to vector<1x16xf32>
    %93 = arith.divf %91, %92 : vector<1x16xf32>
    %94 = vector.broadcast %86 : vector<1x16xf32> to vector<32x16xf32>
    %95 = arith.subf %82, %94 : vector<32x16xf32>
    %cst_24 = arith.constant 9.99999996E-13 : f32
    %96 = vector.broadcast %cst_24 : f32 to vector<1x16xf32>
    %97 = arith.addf %93, %96 : vector<1x16xf32>
    %98 = math.rsqrt %97 : vector<1x16xf32>
    %99 = vector.broadcast %98 : vector<1x16xf32> to vector<32x16xf32>
    %100 = arith.mulf %95, %99 : vector<32x16xf32>
    %101 = vector.broadcast %11 : vector<32x1xf32> to vector<32x16xf32>
    %102 = arith.mulf %100, %101 : vector<32x16xf32>
    %103 = vector.broadcast %12 : vector<32x1xf32> to vector<32x16xf32>
    %104 = arith.addf %102, %103 : vector<32x16xf32>
    %c0_25 = arith.constant 0 : index
    %c0_26 = arith.constant 0 : index
    %105 = vector.load %arg7[%c0_25, %c0_26] : memref<32x16xf32, #tpu.memory_space<vmem>>, vector<32x16xf32>
    tpu.vector_store %arg7[%c0_25, %c0_26], %104 {strides = array<i32>} : memref<32x16xf32, #tpu.memory_space<vmem>>, vector<32x16xf32>,
    return
  }
  func.func @transform_0(%arg0: i32) -> (i32, i32) {
    %c0_i32 = arith.constant 0 : i32
    %c0_i32_0 = arith.constant 0 : i32
    return %c0_i32, %arg0 : i32, i32
  }
  func.func @transform_1(%arg0: i32) -> (i32, i32) {
    %c0_i32 = arith.constant 0 : i32
    %c0_i32_0 = arith.constant 0 : i32
    %c0_i32_1 = arith.constant 0 : i32
    return %c0_i32, %c0_i32_0 : i32, i32
  }
  func.func @transform_2(%arg0: i32) -> (i32, i32) {
    %c0_i32 = arith.constant 0 : i32
    %c0_i32_0 = arith.constant 0 : i32
    %c0_i32_1 = arith.constant 0 : i32
    return %c0_i32, %c0_i32_0 : i32, i32
  }
  func.func @transform_3(%arg0: i32) -> (i32, i32) {
    %c0_i32 = arith.constant 0 : i32
    %c0_i32_0 = arith.constant 0 : i32
    %c0_i32_1 = arith.constant 0 : i32
    return %c0_i32, %c0_i32_0 : i32, i32
  }
  func.func @transform_4(%arg0: i32) -> (i32, i32) {
    %c0_i32 = arith.constant 0 : i32
    %c0_i32_0 = arith.constant 0 : i32
    %c0_i32_1 = arith.constant 0 : i32
    return %c0_i32, %c0_i32_0 : i32, i32
  }
  func.func @transform_5(%arg0: i32) -> (i32, i32) {
    %c0_i32 = arith.constant 0 : i32
    %c0_i32_0 = arith.constant 0 : i32
    %c0_i32_1 = arith.constant 0 : i32
    return %c0_i32, %c0_i32_0 : i32, i32
  }
  func.func @transform_6(%arg0: i32) -> (i32, i32) {
    %c0_i32 = arith.constant 0 : i32
    %c0_i32_0 = arith.constant 0 : i32
    return %c0_i32, %arg0 : i32, i32
  }
}

</mosaic_0001>

<bundles_post_ra>
// kernel: tpu_custom_call.1
= control target key start
LH: loop header
LB: loop body
LE: loop exit
PB: predicated region body
PF: predicated region fallthrough
CT: control target
= control target key end

     0   :  { %11 = vsyncpa [#allocation3], 0  ;;  %s1743_s0 = inlined_call_operand.vmem [shape: f32[4,16], index: 0, kind: input, shape index: {}]   ;;  %s1744_s1 = inlined_call_operand.vmem [shape: f32[32,8], index: 1, kind: input, shape index: {}]   ;;  %s1745_s2 = inlined_call_operand.vmem [shape: f32[32,152], index: 2, kind: input, shape index: {}]   ;;  %s1746_s3 = inlined_call_operand.hbm [shape: f32[32,304], index: 3, kind: input, shape index: {}]   ;;  %s1747_s4 = inlined_call_operand.hbm [shape: f32[32,32], index: 4, kind: input, shape index: {}]   ;;  %s1748_s5 = inlined_call_operand.vmem [shape: f32[32,5], index: 5, kind: input, shape index: {}]   ;;  %s1749_s6 = inlined_call_operand.vmem [shape: f32[32,16], index: 6, kind: output, shape index: {}]  }
   0x1   :  { %12 = vsyncpa [#allocation5], 0  ;;  %s1327_s21 = smov [#allocation2]  }
   0x2   :  { %s24_s22 = sshll.u32 %s1327_s21, 4  ;;  %s25_s22 = int_to_ptr.vmem [resolvable:$true] %s24_s22 }
   0x3   :  { %s1291_s23 = scalar_lea.vmem %s25_s22, 1536  ;;  %p1296_p1 = scmp.lt.s32.totalorder %s25_s22, %s25_s22 }
   0x4   :  { %p1292_p0 = scmp.ne.s32.totalorder %s25_s22, %s1291_s23  ;;  %p1297_p2 = scmp.lt.s32.totalorder %s1291_s23, %s1291_s23 }
   0x6   :  { %p1298_p3 = por %p1297_p2, %p1296_p1 }
   0x8   :  { %p1299_p4 = pnand %p1298_p3, %p1292_p0 }
   0xa   :  { %1302 = shalt.err (!%p1299_p4)
}
   0xb   :  { %s1328_s24 = smov 384   ;;  %s1329_s25 = smov 24  }
   0xc   :  { %30 = dma.hbm_to_vmem [thread:$0]  %s1746_s3, 1536, %s25_s22, [#allocation3], %s1328_s24, %s1328_s24, %s1329_s25  }
   0xd   :  { %s1330_s28 = smov [#allocation4]  }
   0xe   :  { %s36_s29 = sshll.u32 %s1330_s28, 4  ;;  %s37_s29 = int_to_ptr.vmem [resolvable:$true] %s36_s29 }
   0xf   :  { %s1311_s30 = scalar_lea.vmem %s37_s29, 512  ;;  %p1316_p6 = scmp.lt.s32.totalorder %s37_s29, %s37_s29 }
  0x10   :  { %p1312_p5 = scmp.ne.s32.totalorder %s37_s29, %s1311_s30  ;;  %p1317_p7 = scmp.lt.s32.totalorder %s1311_s30, %s1311_s30 }
  0x12   :  { %p1318_p8 = por %p1317_p7, %p1316_p6 }
  0x14   :  { %p1319_p9 = pnand %p1318_p8, %p1312_p5 }
  0x16   :  { %1322 = shalt.err (!%p1319_p9)
}
  0x17   :  { %s1331_s7 = smov 128   ;;  %s1332_s8 = smov 8  }
  0x18   :  { %42 = dma.hbm_to_vmem [thread:$0]  %s1747_s4, 512, %s37_s29, [#allocation5], %s1331_s7, %s1331_s7, %s1332_s8  }
  0x19   :  { %1323 = dma.done.wait [#allocation3], 1536  }
  0x1a   :  { %1324 = vsyncadd [#allocation3], 4294965760 }
  0x1b   :  { %1325 = dma.done.wait [#allocation5], 512  }
  0x1c   :  { %1326 = vsyncadd [#allocation5], 4294966784  ;;  %v82_v0 = vlaneseq  ;;  %v1333_v1 = vmov 0.0   ;;  %v1334_v2 = vmov 1   ;;  %v1335_v3 = vmov 0   ;;  %v150_v6 = vld [vmem:[%s1744_s1] sm:$0xff] }
  0x1d   :  { %365 = vmatprep.subr.mxu1 %v1333_v1  ;;  %1272 = vset.pattern.permute.xlu1 %v1334_v2  ;;  %vm163_vm0 = vcmask 64512   ;;  %v1387_v5 = vld [vmem:[%s1743_s0] sm:$0xf]  ;;  %vm352_vm1 = vcmask 195584   ;;  %v266_v12 = vld [vmem:[%s1745_s2 + $0x8] sm:$0xff]  ;;  %v1336_v21 = vmov 1.0  }
  0x1e   :  { %1271 = vset.pattern.permute.xlu0 %v1335_v3  ;;  %v1382_v4 = vshrl.u32 %v82_v0, 7  ;;  %v1254_v7 = vtrunc.f32 %v1387_v5  ;;  %v1006_v8 = vadd.f32 -1.0, %v1387_v5  ;;  %1216 = vmatprep.mubr.msk.f32.mxu0 %vm163_vm0, %v150_v6  ;;  %v151_v18 = vld [vmem:[%s1744_s1 + $0x8] sm:$0xff]  ;;  %vm138_vm4 = vcmp.lt.f32.partialorder %v1387_v5, 6.0  ;;  %v152_v23 = vld [vmem:[%s1744_s1 + $0x10] sm:$0xff]  ;;  %v1424_v29 = vld [vmem:[%s1748_s5] sm:$0xff] }
  0x1f   :  { %1051 = vmatprep.mubr.msk.f32.mxu1 %vm352_vm1, %v266_v12  ;;  %91 = vperm.xlu1 %1272, %v1424_v29   ;;  %v57_v35 = vadd.f32 1.0, %v1387_v5  ;;  %v60_v48 = vmax.f32 %v1387_v5, 0.0  ;;  %v153_v5 = vld [vmem:[%s1744_s1 + $0x18] sm:$0xff]  ;;  %v458_v12 = vld [vmem:[#allocation2 + $0x20] sm:$0xff] }
  0x20   :  { %v158_v9 = vsub.s32 0, %v1382_v4  ;;  %v1396_v10 = vcvt.f32.s32 %v1254_v7  ;;  %v141_v11 = vmul.f32 0.1, %v1006_v8  ;;  %v108_v16 = vsub.s32 3, %v1382_v4  ;;  %64 = vperm.xlu0 %1271, %v1424_v29   ;;  %v455_v7 = vld [vmem:[#allocation2 + $0x8] sm:$0xff] }
  0x21   :  { %v84_v19 = vsub.s32 2, %v1382_v4  ;;  %v478_v22 = vadd.s32 248, %v1382_v4  ;;  %v287_v25 = vadd.s32 120, %v1382_v4  ;;  %v477_v26 = vadd.s32 240, %v1382_v4 }
  0x22   :  { %v1256_v13 = vtrunc.f32 %v141_v11  ;;  %v145_v14 = vadd.s32 1, %v1396_v10  ;;  %v159_v15 = vrot.slane %v1396_v10, %v158_v9  ;;  %v286_v28 = vadd.s32 112, %v1382_v4  ;;  %v454_v9 = vld [vmem:[#allocation2] sm:$0xff] }
  0x23   :  { %v476_v32 = vadd.s32 232, %v1382_v4  ;;  %v285_v34 = vadd.s32 104, %v1382_v4  ;;  %v475_v36 = vadd.s32 224, %v1382_v4  ;;  %v284_v37 = vadd.s32 96, %v1382_v4 }
  0x24   :  { %v1257_v17 = vcvt.f32.s32 %v1256_v13  ;;  %vm146_vm2 = vcmp.gt.s32.totalorder %v145_v14, 0  ;;  %vm160_vm3 = vcmp.eq.s32.totalorder %v1382_v4, %v159_v15  ;;  %v474_v38 = vadd.s32 216, %v1382_v4 }
  0x25   :  { %v147_v20 = vsel %vm146_vm2, %v145_v14, 0  ;;  %1214 = vmatprep.subr.msk.mxu0 %vm160_vm3, %v1336_v21  ;;  %v283_v39 = vadd.s32 88, %v1382_v4  ;;  %1279 = vlog2.f32 %v57_v35  ;;  %v473_v40 = vadd.s32 208, %v1382_v4  ;;  %v457_v14 = vld [vmem:[#allocation2 + $0x18] sm:$0xff]  ;;  %v791_v35 = vld [vmem:[#allocation4 + $0x8] sm:$0xff] }
  0x26   :  { %v143_v24 = vadd.s32 6, %v1257_v17  ;;  %vm148_vm5 = vcmp.lt.s32.totalorder %v147_v20, 300  ;;  %1215 = vmatpush3.msk.msra.mxu0 %vm160_vm3, %v1336_v21  ;;  %v282_v41 = vadd.s32 80, %v1382_v4  ;;  %v472_v42 = vadd.s32 200, %v1382_v4 }
  0x27   :  { %v149_v27 = vsel %vm148_vm5, %v147_v20, 300  ;;  %1217 = vmatmul.mubr.msk.f32.vlgmr.msra.gmra.mxu0 %vm163_vm0, %v151_v18  ;;  %v281_v43 = vadd.s32 72, %v1382_v4  ;;  %v471_v44 = vadd.s32 192, %v1382_v4  ;;  %v280_v45 = vadd.s32 64, %v1382_v4  ;;  %v460_v18 = vld [vmem:[#allocation2 + $0x30] sm:$0xff] }
  0x28   :  { %v144_v30 = vsel %vm138_vm4, %v1396_v10, %v143_v24  ;;  %v1429_v31 = vrot.slane %v149_v27, %v108_v16  ;;  %1219 = vmatprep.mubr.msk.f32.mxu0 %vm163_vm0, %v152_v23  ;;  %v470_v46 = vadd.s32 184, %v1382_v4  ;;  %v279_v47 = vadd.s32 56, %v1382_v4  ;;  %v463_v24 = vld [vmem:[#allocation2 + $0x48] sm:$0xff]  ;;  %v456_v27 = vld [vmem:[#allocation2 + $0x10] sm:$0xff] }
  0x29   :  { %v1436_v33 = vrot.slane %v144_v30, %v84_v19  ;;  %v469_v49 = vadd.s32 176, %v1382_v4  ;;  %v278_v50 = vadd.s32 48, %v1382_v4  ;;  %v468_v51 = vadd.s32 168, %v1382_v4  ;;  %v272_v30 = vld [vmem:[%s1745_s2 + $0x38] sm:$0xff] }
  0x2a   :  { %vm520_vm6 = vcmp.eq.s32.totalorder %v478_v22, %v1429_v31  ;;  %vm504_vm7 = vcmp.eq.s32.totalorder %v287_v25, %v1429_v31  ;;  %vm519_vm8 = vcmp.eq.s32.totalorder %v477_v26, %v1429_v31  ;;  %vm503_vm11 = vcmp.eq.s32.totalorder %v286_v28, %v1429_v31  ;;  %v464_v22 = vld [vmem:[#allocation2 + $0x50] sm:$0xff]  ;;  %v269_v26 = vld [vmem:[%s1745_s2 + $0x20] sm:$0xff] }
  0x2b   :  { %1152 = vmatprep.subr.msk.mxu0 %vm520_vm6, %v1336_v21  ;;  %vm310_vm9 = vcmp.eq.s32.totalorder %v287_v25, %v1436_v33  ;;  %vm309_vm10 = vcmp.eq.s32.totalorder %v286_v28, %v1436_v33  ;;  %vm518_vm12 = vcmp.eq.s32.totalorder %v476_v32, %v1429_v31  ;;  %vm308_vm13 = vcmp.eq.s32.totalorder %v285_v34, %v1436_v33  ;;  %v270_v25 = vld [vmem:[%s1745_s2 + $0x28] sm:$0xff]  ;;  %v462_v32 = vld [vmem:[#allocation2 + $0x40] sm:$0xff] }
  0x2c   :  { %1032 = vmatpush1.msk.msra.mxu1 %vm310_vm9, %v1336_v21  ;;  %1153 = vmatpush3.msk.msra.mxu0 %vm504_vm7, %v1336_v21  ;;  %vm502_vm14 = vcmp.eq.s32.totalorder %v285_v34, %v1429_v31  ;;  %vm517_vm15 = vcmp.eq.s32.totalorder %v475_v36, %v1429_v31  ;;  %vm307_vm2 = vcmp.eq.s32.totalorder %v284_v37, %v1436_v33  ;;  %v277_v52 = vadd.s32 40, %v1382_v4  ;;  %v459_v28 = vld [vmem:[#allocation2 + $0x28] sm:$0xff]  ;;  %v792_v36 = vld [vmem:[#allocation4 + $0x10] sm:$0xff] }
  0x2d   :  { %367 = vmatprep.subr.mxu1 %v1333_v1  ;;  %1154 = vmatprep.subr.msk.mxu0 %vm519_vm8, %v1336_v21  ;;  %vm501_vm3 = vcmp.eq.s32.totalorder %v284_v37, %v1429_v31  ;;  %vm516_vm4 = vcmp.eq.s32.totalorder %v474_v38, %v1429_v31  ;;  %vm306_vm5 = vcmp.eq.s32.totalorder %v283_v39, %v1436_v33  ;;  %v61_v53 = vmin.f32 %v60_v48, 300.0  ;;  %v54_v34 = vld [vmem:[%s1748_s5 + $0x8] sm:$0xff]  ;;  %v55_v37 = vld [vmem:[%s1748_s5 + $0x10] sm:$0xff]  ;;  %v793_v38 = vld [vmem:[#allocation4 + $0x18] sm:$0xff] }
  0x2e   :  { %1033 = vmatpush1.msk.msra.mxu1 %vm309_vm10, %v1336_v21  ;;  %1155 = vmatpush3.msk.msra.mxu0 %vm503_vm11, %v1336_v21  ;;  %vm500_vm6 = vcmp.eq.s32.totalorder %v283_v39, %v1429_v31  ;;  %vm515_vm7 = vcmp.eq.s32.totalorder %v473_v40, %v1429_v31  ;;  %vm305_vm8 = vcmp.eq.s32.totalorder %v282_v41, %v1436_v33  ;;  %v467_v55 = vadd.s32 160, %v1382_v4 }
  0x2f   :  { %369 = vmatprep.subr.mxu1 %v1333_v1  ;;  %1156 = vmatprep.subr.msk.mxu0 %vm518_vm12, %v1336_v21  ;;  %vm499_vm9 = vcmp.eq.s32.totalorder %v282_v41, %v1429_v31  ;;  %vm514_vm10 = vcmp.eq.s32.totalorder %v472_v42, %v1429_v31  ;;  %vm304_vm11 = vcmp.eq.s32.totalorder %v281_v43, %v1436_v33  ;;  %v276_v56 = vadd.s32 32, %v1382_v4 }
  0x30   :  { %1034 = vmatpush1.msk.msra.mxu1 %vm308_vm13, %v1336_v21  ;;  %1157 = vmatpush3.msk.msra.mxu0 %vm502_vm14, %v1336_v21  ;;  %vm498_vm12 = vcmp.eq.s32.totalorder %v281_v43, %v1429_v31  ;;  %vm513_vm13 = vcmp.eq.s32.totalorder %v471_v44, %v1429_v31  ;;  %vm303_vm14 = vcmp.eq.s32.totalorder %v280_v45, %v1436_v33  ;;  %v466_v58 = vadd.s32 152, %v1382_v4 }
  0x31   :  { %371 = vmatprep.subr.mxu1 %v1333_v1  ;;  %1158 = vmatprep.subr.msk.mxu0 %vm517_vm15, %v1336_v21  ;;  %vm497_vm15 = vcmp.eq.s32.totalorder %v280_v45, %v1429_v31  ;;  %v1532_v59 = vadd.s32 24, %v1382_v4  ;;  %v1536_v60 = vrot.slane %v61_v53, %v108_v16  ;;  %v290_v61 = vadd.s32 144, %v1382_v4  ;;  %v461_v16 = vld [vmem:[#allocation2 + $0x38] sm:$0xff] }
  0x32   :  { %1035 = vmatpush1.msk.msra.mxu1 %vm307_vm2, %v1336_v21  ;;  %1159 = vmatpush3.msk.msra.mxu0 %vm501_vm3, %v1336_v21  ;;  %vm512_vm2 = vcmp.eq.s32.totalorder %v470_v46, %v1429_v31  ;;  %vm302_vm3 = vcmp.eq.s32.totalorder %v279_v47, %v1436_v33  ;;  %v1280_v54 = vpop.eup %1279  ;;  %v1551_v63 = vadd.s32 16, %v1382_v4  ;;  %v289_v0 = vadd.s32 136, %v1382_v4 }
  0x33   :  { %373 = vmatprep.subr.mxu1 %v1333_v1  ;;  %1160 = vmatprep.subr.msk.mxu0 %vm516_vm4, %v1336_v21  ;;  %vm496_vm4 = vcmp.eq.s32.totalorder %v279_v47, %v1429_v31  ;;  %v59_v57 = vmul.f32 0.6931472, %v1280_v54  ;;  %v1564_v2 = vadd.s32 8, %v1382_v4  ;;  %v288_v3 = vadd.s32 128, %v1382_v4 }
  0x34   :  { %1036 = vmatpush1.msk.msra.mxu1 %vm306_vm5, %v1336_v21  ;;  %1161 = vmatpush3.msk.msra.mxu0 %vm500_vm6, %v1336_v21  ;;  %vm511_vm5 = vcmp.eq.s32.totalorder %v469_v49, %v1429_v31  ;;  %vm301_vm6 = vcmp.eq.s32.totalorder %v278_v50, %v1436_v33  ;;  %v484_v6 = vadd.s32 296, %v1382_v4  ;;  %v796_v8 = vsub.s32 1, %v1382_v4 }
  0x35   :  { %375 = vmatprep.subr.mxu1 %v1333_v1  ;;  %1162 = vmatprep.subr.msk.mxu0 %vm515_vm7, %v1336_v21  ;;  %vm495_vm7 = vcmp.eq.s32.totalorder %v278_v50, %v1429_v31  ;;  %v1544_v62 = vrot.slane %v59_v57, %v84_v19  ;;  %v483_v11 = vadd.s32 288, %v1382_v4  ;;  %v482_v15 = vadd.s32 280, %v1382_v4  ;;  %v267_v19 = vld [vmem:[%s1745_s2 + $0x10] sm:$0xff] }
  0x36   :  { %1037 = vmatpush1.msk.msra.mxu1 %vm305_vm8, %v1336_v21  ;;  %1163 = vmatpush3.msk.msra.mxu0 %vm499_vm9, %v1336_v21  ;;  %vm510_vm8 = vcmp.eq.s32.totalorder %v468_v51, %v1429_v31  ;;  %vm300_vm9 = vcmp.eq.s32.totalorder %v277_v52, %v1436_v33  ;;  %v1612_v13 = vrot.slane %v1396_v10, %v796_v8  ;;  %v265_v10 = vld [vmem:[%s1745_s2] sm:$0xff]  ;;  %v481_v17 = vadd.s32 272, %v1382_v4 }
  0x37   :  { %377 = vmatprep.subr.mxu1 %v1333_v1  ;;  %1164 = vmatprep.subr.msk.mxu0 %vm514_vm10, %v1336_v21  ;;  %vm494_vm10 = vcmp.eq.s32.totalorder %v277_v52, %v1429_v31  ;;  %v480_v20 = vadd.s32 264, %v1382_v4  ;;  %v479_v23 = vadd.s32 256, %v1382_v4  ;;  %v1337_v39 = vmov 2  }
  0x38   :  { %1038 = vmatpush1.msk.msra.mxu1 %vm304_vm11, %v1336_v21  ;;  %1165 = vmatpush3.msk.msra.mxu0 %vm498_vm12, %v1336_v21  ;;  %vm509_vm11 = vcmp.eq.s32.totalorder %v467_v55, %v1429_v31  ;;  %vm299_vm12 = vcmp.eq.s32.totalorder %v276_v56, %v1436_v33  ;;  %v1338_v40 = vmov 3   ;;  %v1339_v41 = vmov 4  }
  0x39   :  { %379 = vmatprep.subr.mxu1 %v1333_v1  ;;  %1166 = vmatprep.subr.msk.mxu0 %vm513_vm13, %v1336_v21  ;;  %vm493_vm13 = vcmp.eq.s32.totalorder %v276_v56, %v1429_v31 }
  0x3a   :  { %1039 = vmatpush1.msk.msra.mxu1 %vm303_vm14, %v1336_v21  ;;  %1167 = vmatpush3.msk.msra.mxu0 %vm497_vm15, %v1336_v21  ;;  %vm508_vm14 = vcmp.eq.s32.totalorder %v466_v58, %v1429_v31  ;;  %vm298_vm15 = vcmp.eq.s32.totalorder %v1532_v59, %v1436_v33 }
  0x3b   :  { %381 = vmatprep.subr.mxu1 %v1333_v1  ;;  %1168 = vmatprep.subr.msk.mxu0 %vm512_vm2, %v1336_v21  ;;  %vm492_vm2 = vcmp.eq.s32.totalorder %v1532_v59, %v1429_v31 }
  0x3c   :  { %1040 = vmatpush1.msk.msra.mxu1 %vm302_vm3, %v1336_v21  ;;  %1169 = vmatpush3.msk.msra.mxu0 %vm496_vm4, %v1336_v21  ;;  %vm507_vm3 = vcmp.eq.s32.totalorder %v290_v61, %v1429_v31  ;;  %vm297_vm4 = vcmp.eq.s32.totalorder %v1551_v63, %v1436_v33 }
  0x3d   :  { %383 = vmatprep.subr.mxu1 %v1333_v1  ;;  %1170 = vmatprep.subr.msk.mxu0 %vm511_vm5, %v1336_v21  ;;  %vm491_vm5 = vcmp.eq.s32.totalorder %v1551_v63, %v1429_v31 }
  0x3e   :  { %1041 = vmatpush1.msk.msra.mxu1 %vm301_vm6, %v1336_v21  ;;  %1171 = vmatpush3.msk.msra.mxu0 %vm495_vm7, %v1336_v21  ;;  %vm506_vm6 = vcmp.eq.s32.totalorder %v289_v0, %v1429_v31  ;;  %vm296_vm7 = vcmp.eq.s32.totalorder %v1564_v2, %v1436_v33 }
  0x3f   :  { %385 = vmatprep.subr.mxu1 %v1333_v1  ;;  %1172 = vmatprep.subr.msk.mxu0 %vm510_vm8, %v1336_v21  ;;  %vm490_vm8 = vcmp.eq.s32.totalorder %v1564_v2, %v1429_v31 }
  0x40   :  { %1042 = vmatpush1.msk.msra.mxu1 %vm300_vm9, %v1336_v21  ;;  %1173 = vmatpush3.msk.msra.mxu0 %vm494_vm10, %v1336_v21  ;;  %vm505_vm9 = vcmp.eq.s32.totalorder %v288_v3, %v1429_v31  ;;  %vm295_vm10 = vcmp.eq.s32.totalorder %v1382_v4, %v1436_v33 }
  0x41   :  { %387 = vmatprep.subr.mxu1 %v1333_v1  ;;  %1174 = vmatprep.subr.msk.mxu0 %vm509_vm11, %v1336_v21  ;;  %vm489_vm11 = vcmp.eq.s32.totalorder %v1382_v4, %v1429_v31 }
  0x42   :  { %1043 = vmatpush1.msk.msra.mxu1 %vm299_vm12, %v1336_v21  ;;  %1175 = vmatpush3.msk.msra.mxu0 %vm493_vm13, %v1336_v21  ;;  %vm526_vm12 = vcmp.eq.s32.totalorder %v484_v6, %v1429_v31  ;;  %vm312_vm13 = vcmp.eq.s32.totalorder %v289_v0, %v1436_v33 }
  0x43   :  { %389 = vmatprep.subr.mxu1 %v1333_v1  ;;  %1176 = vmatprep.subr.msk.mxu0 %vm508_vm14, %v1336_v21  ;;  %vm311_vm14 = vcmp.eq.s32.totalorder %v288_v3, %v1436_v33 }
  0x44   :  { %1044 = vmatpush1.msk.msra.mxu1 %vm298_vm15, %v1336_v21  ;;  %1177 = vmatpush3.msk.msra.mxu0 %vm492_vm2, %v1336_v21  ;;  %vm525_vm15 = vcmp.eq.s32.totalorder %v483_v11, %v1429_v31  ;;  %vm801_vm2 = vcmp.eq.s32.totalorder %v1532_v59, %v1612_v13 }
  0x45   :  { %391 = vmatprep.subr.mxu1 %v1333_v1  ;;  %1178 = vmatprep.subr.msk.mxu0 %vm507_vm3, %v1336_v21  ;;  %vm524_vm3 = vcmp.eq.s32.totalorder %v482_v15, %v1429_v31 }
  0x46   :  { %1045 = vmatpush1.msk.msra.mxu1 %vm297_vm4, %v1336_v21  ;;  %1179 = vmatpush3.msk.msra.mxu0 %vm491_vm5, %v1336_v21  ;;  %vm523_vm4 = vcmp.eq.s32.totalorder %v481_v17, %v1429_v31  ;;  %vm800_vm5 = vcmp.eq.s32.totalorder %v1551_v63, %v1612_v13 }
  0x47   :  { %1220 = vmatmul.mubr.msk.f32.gmra.mxu0 %vm163_vm0, %v153_v5  ;;  %393 = vmatprep.subr.mxu1 %v1333_v1  ;;  %vm313_vm0 = vcmp.eq.s32.totalorder %v290_v61, %v1436_v33  ;;  %v790_v33 = vld [vmem:[#allocation4] sm:$0xff] }
  0x48   :  { %1180 = vmatprep.subr.msk.mxu0 %vm506_vm6, %v1336_v21  ;;  %1046 = vmatpush1.msk.msra.mxu1 %vm296_vm7, %v1336_v21  ;;  %vm522_vm6 = vcmp.eq.s32.totalorder %v480_v20, %v1429_v31  ;;  %vm521_vm7 = vcmp.eq.s32.totalorder %v479_v23, %v1429_v31  ;;  %v271_v31 = vld [vmem:[%s1745_s2 + $0x30] sm:$0xff] }
  0x49   :  { %1181 = vmatpush3.msk.msra.mxu0 %vm490_vm8, %v1336_v21  ;;  %395 = vmatprep.subr.mxu1 %v1333_v1  ;;  %vm799_vm8 = vcmp.eq.s32.totalorder %v1564_v2, %v1612_v13 }
  0x4a   :  { %1182 = vmatprep.subr.msk.mxu0 %vm505_vm9, %v1336_v21  ;;  %1047 = vmatpush1.msk.msra.mxu1 %vm295_vm10, %v1336_v21  ;;  %vm603_vm9 = vcmask 392192   ;;  %vm798_vm10 = vcmp.eq.s32.totalorder %v1382_v4, %v1612_v13  ;;  %v465_v4 = vld [vmem:[#allocation2 + $0x58] sm:$0xff] }
  0x4b   :  { %1183 = vmatpush3.msk.msra.mxu0 %vm489_vm11, %v1336_v21  ;;  %680 = vmatprep.mubr.f32.mxu0 %v455_v7  ;;  %vm810_vm11 = vcmask 261120  }
  0x4c   :  { %423 = vmatprep.subr.mxu1 %v1333_v1  ;;  %681 = vmatmul.mubr.f32.vlgmr.msra.gmra.mxu0 %v454_v9 }
  0x4d   :  { %1048 = vmatpush2.msk.msra.mxu1 %vm313_vm0, %v1336_v21  ;;  %1222 = vmatprep.subr.msk.mxu0 %vm526_vm12, %v1336_v21 }
  0x4e   :  { %425 = vmatprep.subr.mxu1 %v1333_v1  ;;  %685 = vmatprep.mubr.f32.mxu0 %v458_v12 }
  0x4f   :  { %1049 = vmatpush2.msk.msra.mxu1 %vm312_vm13, %v1336_v21  ;;  %1223 = vmatpush3.msk.msra.mxu0 %vm526_vm12, %v1336_v21 }
  0x50   :  { %427 = vmatprep.subr.mxu1 %v1333_v1  ;;  %686 = vmatmul.mubr.f32.gmra.mxu0 %v457_v14  ;;  %v268_v1 = vld [vmem:[%s1745_s2 + $0x18] sm:$0xff] }
  0x51   :  { %1050 = vmatpush2.msk.msra.mxu1 %vm311_vm14, %v1336_v21  ;;  %1224 = vmatprep.subr.msk.mxu0 %vm525_vm15, %v1336_v21 }
  0x52   :  { %430 = vmatmul.mubr.f32.vlgmr.msra.gmra.mxu1 %v265_v10  ;;  %1225 = vmatpush3.msk.msra.mxu0 %vm525_vm15, %v1336_v21 }
  0x53   :  { %1240 = vmatprep.subr.msk.mxu1 %vm801_vm2, %v1336_v21  ;;  %690 = vmatprep.mubr.f32.mxu0 %v461_v16 }
  0x54   :  { %1241 = vmatpush3.msk.msra.mxu1 %vm801_vm2, %v1336_v21  ;;  %691 = vmatmul.mubr.f32.gmra.mxu0 %v460_v18 }
  0x55   :  { %1226 = vmatprep.subr.msk.mxu0 %vm524_vm3, %v1336_v21  ;;  %1052 = vmatprep.mubr.msk.f32.mxu1 %vm352_vm1, %v268_v1 }
  0x56   :  { %1227 = vmatpush3.msk.msra.mxu0 %vm524_vm3, %v1336_v21  ;;  %435 = vmatmul.mubr.f32.gmra.mxu1 %v267_v19 }
  0x57   :  { %1228 = vmatprep.subr.msk.mxu0 %vm523_vm4, %v1336_v21  ;;  %1242 = vmatprep.subr.msk.mxu1 %vm800_vm5, %v1336_v21 }
  0x58   :  { %695 = vmatprep.mubr.f32.mxu0 %v464_v22  ;;  %1229 = vmatpush3.msk.msra.mxu0 %vm523_vm4, %v1336_v21 }
  0x59   :  { %1243 = vmatpush3.msk.msra.mxu1 %vm800_vm5, %v1336_v21  ;;  %696 = vmatmul.mubr.f32.gmra.mxu0 %v463_v24 }
  0x5a   :  { %1230 = vmatprep.subr.msk.mxu0 %vm522_vm6, %v1336_v21  ;;  %1053 = vmatprep.mubr.msk.f32.mxu1 %vm352_vm1, %v270_v25 }
  0x5b   :  { %1231 = vmatpush3.msk.msra.mxu0 %vm522_vm6, %v1336_v21  ;;  %440 = vmatmul.mubr.f32.gmra.mxu1 %v269_v26 }
  0x5c   :  { %1232 = vmatprep.subr.msk.mxu0 %vm521_vm7, %v1336_v21  ;;  %1244 = vmatprep.subr.msk.mxu1 %vm799_vm8, %v1336_v21 }
  0x5d   :  { %1233 = vmatpush3.msk.msra.mxu0 %vm521_vm7, %v1336_v21  ;;  %1234 = vmatprep.mubr.msk.f32.mxu0 %vm603_vm9, %v456_v27 }
  0x5e   :  { %1245 = vmatpush3.msk.msra.mxu1 %vm799_vm8, %v1336_v21  ;;  %1235 = vmatmul.mubr.msk.f32.vlgmr.msra.gmra.mxu0 %vm603_vm9, %v459_v28 }
  0x5f   :  { %1054 = vmatprep.mubr.msk.f32.mxu1 %vm352_vm1, %v272_v30  ;;  %1246 = vmatprep.subr.msk.mxu1 %vm798_vm10, %v1336_v21  ;;  %vm912_vm1 = vcmask 130048  }
  0x60   :  { %445 = vmatmul.mubr.f32.gmra.mxu1 %v271_v31  ;;  %1237 = vmatprep.mubr.msk.f32.mxu0 %vm603_vm9, %v462_v32 }
  0x61   :  { %1247 = vmatpush3.msk.msra.mxu1 %vm798_vm10, %v1336_v21  ;;  %1248 = vmatprep.mubr.msk.f32.mxu1 %vm810_vm11, %v790_v33  ;;  %v56_v21 = vld [vmem:[%s1748_s5 + $0x18] sm:$0xff] }
  0x62   :  { %1238 = vmatmul.mubr.msk.f32.gmra.mxu0 %vm603_vm9, %v465_v4  ;;  %95 = vperm.xlu1 %1272, %v54_v34  }
  0x63   :  { %69 = vperm.xlu0 %1271, %v54_v34  }
  0x64   :  { %1249 = vmatmul.mubr.msk.f32.vlgmr.msra.gmra.mxu1 %vm810_vm11, %v791_v35 }
  0x65   :  { %1251 = vmatprep.mubr.msk.f32.mxu1 %vm810_vm11, %v792_v36 }
  0x66   :  { %99 = vperm.xlu1 %1272, %v55_v37  }
  0x67   :  { %74 = vperm.xlu0 %1271, %v55_v37  }
  0x68   :  { %1252 = vmatmul.mubr.msk.f32.gmra.mxu1 %vm810_vm11, %v793_v38 }
  0x6a   :  { %103 = vperm.xlu1 %1272, %v56_v21  }
  0x6b   :  { %79 = vperm.xlu0 %1271, %v56_v21  }
  0x6e   :  { %1274 = vset.pattern.permute.xlu1 %v1337_v39 }
  0x6f   :  { %1273 = vset.pattern.permute.xlu0 %v1337_v39  ;;  %123 = vperm.xlu1 %1274, %v54_v34  }
  0x70   :  { %119 = vperm.xlu0 %1273, %v1424_v29  }
  0x73   :  { %127 = vperm.xlu1 %1274, %v55_v37  }
  0x74   :  { %131 = vperm.xlu0 %1273, %v56_v21  }
  0x77   :  { %1275 = vset.pattern.permute.xlu1 %v1338_v40 }
  0x78   :  { %957 = vperm.xlu1 %1275, %v1424_v29   ;;  %1276 = vset.pattern.permute.xlu0 %v1338_v40 }
  0x79   :  { %961 = vperm.xlu0 %1276, %v54_v34  }
  0x7c   :  { %965 = vperm.xlu1 %1275, %v55_v37  }
  0x7d   :  { %1277 = vset.pattern.permute.xlu0 %v1339_v41 }
  0x7e   :  { %977 = vperm.xlu0 %1277, %v1424_v29  }
  0x80   :  { %969 = vperm.xlu1 %1275, %v56_v21  }
  0x82   :  { %989 = vperm.xlu0 %1277, %v56_v21  }
  0x84   :  { %1278 = vset.pattern.permute.xlu1 %v1339_v41 }
  0x85   :  { %981 = vperm.xlu1 %1278, %v54_v34  }
  0x89   :  { %985 = vperm.xlu1 %1278, %v55_v37  }
  0x9a   :  { %v92_v42 = vpop.permute.xlu1 %91 }
  0x9b   :  { %v110_v43 = vmul.f32 %v1536_v60, %v92_v42  ;;  %v65_v44 = vpop.permute.xlu0 %64 }
  0x9c   :  { %v86_v45 = vmul.f32 %v1544_v62, %v65_v44 }
  0x9e   :  { %v114_v46 = vadd.f32 %v110_v43, %v86_v45 }
  0xdd   :  { %v96_v47 = vpop.permute.xlu1 %95 }
  0xde   :  { %v111_v48 = vmul.f32 %v1536_v60, %v96_v47  ;;  %v70_v49 = vpop.permute.xlu0 %69 }
  0xdf   :  { %v87_v50 = vmul.f32 %v1544_v62, %v70_v49 }
  0xe1   :  { %v100_v51 = vpop.permute.xlu1 %99  ;;  %v115_v29 = vadd.f32 %v111_v48, %v87_v50 }
  0xe2   :  { %v112_v52 = vmul.f32 %v1536_v60, %v100_v51  ;;  %v75_v53 = vpop.permute.xlu0 %74 }
  0xe3   :  { %v88_v54 = vmul.f32 %v1544_v62, %v75_v53 }
  0xe5   :  { %v104_v55 = vpop.permute.xlu1 %103  ;;  %v116_v56 = vadd.f32 %v112_v52, %v88_v54 }
  0xe6   :  { %v113_v57 = vmul.f32 %v1536_v60, %v104_v55  ;;  %v80_v58 = vpop.permute.xlu0 %79 }
  0xe7   :  { %v89_v59 = vmul.f32 %v1544_v62, %v80_v58  ;;  %v1218_v63 = vpop.f32.mrf.mxu0 }
  0xe9   :  { %v117_v61 = vadd.f32 %v113_v57, %v89_v59  ;;  %v242_v0 = vpop.f32.mrf.mxu0 }
  0xea   :  { %v124_v15 = vpop.permute.xlu1 %123 }
  0xeb   :  { %v120_v60 = vpop.permute.xlu0 %119  ;;  %v135_v17 = vadd.f32 %v124_v15, %v115_v29 }
  0xec   :  { %v134_v19 = vadd.f32 %v120_v60, %v114_v46 }
  0xed   :  { %v262_v25 = vadd.f32 %v1218_v63, %v135_v17 }
  0xee   :  { %v128_v1 = vpop.permute.xlu1 %127  ;;  %v261_v33 = vadd.f32 %v242_v0, %v134_v19 }
  0xef   :  { %v132_v20 = vpop.permute.xlu0 %131  ;;  %v136_v28 = vadd.f32 %v128_v1, %v116_v56 }
  0xf0   :  { %v137_v30 = vadd.f32 %v132_v20, %v117_v61 }
 0x107   :  { %v1221_v2 = vpop.f32.mrf.mxu0 }
 0x108   :  { %v264_v41 = vadd.f32 %v1221_v2, %v137_v30 }
 0x109   :  { %v252_v3 = vpop.f32.mrf.mxu0 }
 0x10a   :  { %v263_v40 = vadd.f32 %v252_v3, %v136_v28 }
 0x10c   :  { %v1184_v5 = vpop.f32.mrf.mxu0 }
 0x10e   :  { %v1185_v6 = vpop.f32.mrf.mxu0 }
 0x10f   :  { %v1186_v26 = vadd.f32 %v1185_v6, %v1184_v5 }
 0x110   :  { %v1187_v7 = vpop.f32.mrf.mxu0 }
 0x112   :  { %v431_v8 = vpop.f32.mrf.mxu1  ;;  %v1188_v9 = vpop.f32.mrf.mxu0 }
 0x113   :  { %v1189_v22 = vadd.f32 %v1188_v9, %v1187_v7  ;;  %v450_v37 = vadd.f32 %v431_v8, %v261_v33 }
 0x114   :  { %v433_v11 = vpop.f32.mrf.mxu1  ;;  %v1190_v12 = vpop.f32.mrf.mxu0 }
 0x116   :  { %v436_v13 = vpop.f32.mrf.mxu1  ;;  %v1191_v14 = vpop.f32.mrf.mxu0 }
 0x117   :  { %v451_v4 = vadd.f32 %v436_v13, %v262_v25  ;;  %v1192_v38 = vadd.f32 %v1191_v14, %v1190_v12 }
 0x118   :  { %v438_v10 = vpop.f32.mrf.mxu1 }
 0x119   :  { %v1193_v16 = vpop.f32.mrf.mxu0 }
 0x11b   :  { %v441_v62 = vpop.f32.mrf.mxu1  ;;  %v1194_v18 = vpop.f32.mrf.mxu0 }
 0x11c   :  { %v1195_v21 = vadd.f32 %v1194_v18, %v1193_v16  ;;  %v452_v49 = vadd.f32 %v441_v62, %v263_v40 }
 0x11d   :  { %v443_v23 = vpop.f32.mrf.mxu1 }
 0x11e   :  { %v1236_v24 = vpop.f32.mrf.mxu0 }
 0x11f   :  { %v773_v27 = vadd.f32 %v1236_v24, %v1189_v22 }
 0x120   :  { %v446_v31 = vpop.f32.mrf.mxu1  ;;  %v767_v32 = vpop.f32.mrf.mxu0 }
 0x121   :  { %v768_v34 = vadd.f32 %v1186_v26, %v767_v32  ;;  %v787_v39 = vadd.f32 %v773_v27, %v451_v4  ;;  %v453_v50 = vadd.f32 %v446_v31, %v264_v41  ;;  %v958_v31 = vpop.permute.xlu1 %957 }
 0x122   :  { %v448_v35 = vpop.f32.mrf.mxu1  ;;  %v1239_v36 = vpop.f32.mrf.mxu0 }
 0x123   :  { %v783_v44 = vadd.f32 %v1239_v36, %v1195_v21  ;;  %v786_v47 = vadd.f32 %v768_v34, %v450_v37  ;;  %v962_v34 = vpop.permute.xlu0 %961 }
 0x124   :  { %v777_v42 = vpop.f32.mrf.mxu0  ;;  %v1250_v43 = vpop.f32.mrf.mxu1 }
 0x125   :  { %v778_v45 = vadd.f32 %v1192_v38, %v777_v42  ;;  %v909_v46 = vadd.f32 %v1250_v43, %v787_v39  ;;  %v789_v54 = vadd.f32 %v783_v44, %v453_v50  ;;  %v966_v4 = vpop.permute.xlu1 %965 }
 0x126   :  { %v889_v48 = vpop.f32.mrf.mxu1 }
 0x127   :  { %v908_v51 = vadd.f32 %v889_v48, %v786_v47  ;;  %v914_v52 = vsel %vm912_vm1, %v909_v46, 0.0  ;;  %v788_v55 = vadd.f32 %v778_v45, %v452_v49  ;;  %v978_v37 = vpop.permute.xlu0 %977 }
 0x128   :  { %v1253_v29 = vpop.f32.mrf.mxu1 }
 0x129   :  { %v913_v53 = vsel %vm912_vm1, %v908_v51, 0.0  ;;  %v911_v58 = vadd.f32 %v1253_v29, %v789_v54  ;;  %v970_v35 = vpop.permute.xlu1 %969 }
 0x12a   :  { %v915_v56 = vadd.f32 %v914_v52, %v913_v53  ;;  %v899_v57 = vpop.f32.mrf.mxu1 }
 0x12b   :  { %v910_v59 = vadd.f32 %v899_v57, %v788_v55  ;;  %v918_v0 = vsel %vm912_vm1, %v911_v58, 0.0  ;;  %v990_v47 = vpop.permute.xlu0 %989 }
 0x12d   :  { %v916_v61 = vsel %vm912_vm1, %v910_v59, 0.0  ;;  %v982_v36 = vpop.permute.xlu1 %981 }
 0x12e   :  { %v917_v63 = vadd.f32 %v916_v61, %v915_v56 }
 0x130   :  { %v919_v2 = vadd.f32 %v918_v0, %v917_v63 }
 0x132   :  { %v920_v3 = vrot.slane %v919_v2, 4 }
 0x134   :  { %v921_v5 = vadd.f32 %v920_v3, %v919_v2 }
 0x136   :  { %v922_v6 = vrot.slane %v921_v5, 2 }
 0x138   :  { %v923_v7 = vadd.f32 %v922_v6, %v921_v5 }
 0x13a   :  { %v924_v8 = vrot.slane %v923_v7, 1 }
 0x13c   :  { %v925_v9 = vadd.f32 %v924_v8, %v923_v7 }
 0x13e   :  { %v927_v11 = vmul.f32 0.03125, %v925_v9 }
 0x140   :  { %v929_v12 = vsub.f32 %v909_v46, %v927_v11  ;;  %v930_v13 = vsub.f32 %v910_v59, %v927_v11  ;;  %v931_v14 = vsub.f32 %v911_v58, %v927_v11  ;;  %v928_v15 = vsub.f32 %v908_v51, %v927_v11  ;;  %v986_v46 = vpop.permute.xlu1 %985 }
 0x142   :  { %v934_v10 = vmul.f32 %v930_v13, %v930_v13  ;;  %v932_v60 = vmul.f32 %v928_v15, %v928_v15  ;;  %v933_v16 = vmul.f32 %v929_v12, %v929_v12  ;;  %v935_v17 = vmul.f32 %v931_v14, %v931_v14 }
 0x144   :  { %v936_v62 = vsel %vm912_vm1, %v932_v60, 0.0  ;;  %v937_v18 = vsel %vm912_vm1, %v933_v16, 0.0  ;;  %v939_v19 = vsel %vm912_vm1, %v934_v10, 0.0  ;;  %v941_v22 = vsel %vm912_vm1, %v935_v17, 0.0 }
 0x145   :  { %v938_v1 = vadd.f32 %v937_v18, %v936_v62 }
 0x147   :  { %v940_v20 = vadd.f32 %v939_v19, %v938_v1 }
 0x149   :  { %v942_v23 = vadd.f32 %v941_v22, %v940_v20 }
 0x14b   :  { %v943_v24 = vrot.slane %v942_v23, 4 }
 0x14d   :  { %v944_v25 = vadd.f32 %v943_v24, %v942_v23 }
 0x14f   :  { %v945_v26 = vrot.slane %v944_v25, 2 }
 0x151   :  { %v946_v27 = vadd.f32 %v945_v26, %v944_v25 }
 0x153   :  { %v947_v28 = vrot.slane %v946_v27, 1 }
 0x155   :  { %v948_v30 = vadd.f32 %v947_v28, %v946_v27 }
 0x157   :  { %v949_v32 = vmul.f32 0.03125, %v948_v30 }
 0x159   :  { %v950_v33 = vadd.f32 1e-12, %v949_v32 }
 0x15b   :  { %1281 = vrsqrt.f32 %v950_v33 }
 0x168   :  { %v1282_v38 = vpop.eup %1281 }
 0x169   :  { %v952_v21 = vmul.f32 %v1282_v38, %v928_v15  ;;  %v954_v39 = vmul.f32 %v1282_v38, %v930_v13  ;;  %v955_v40 = vmul.f32 %v1282_v38, %v931_v14  ;;  %v953_v41 = vmul.f32 %v1282_v38, %v929_v12 }
 0x16b   :  { %v972_v42 = vmul.f32 %v958_v31, %v952_v21  ;;  %v974_v43 = vmul.f32 %v966_v4, %v954_v39  ;;  %v975_v44 = vmul.f32 %v970_v35, %v955_v40  ;;  %v973_v45 = vmul.f32 %v962_v34, %v953_v41 }
 0x16d   :  { %v993_v48 = vadd.f32 %v982_v36, %v973_v45  ;;  %v992_v49 = vadd.f32 %v978_v37, %v972_v42  ;;  %v994_v50 = vadd.f32 %v986_v46, %v974_v43  ;;  %v995_v51 = vadd.f32 %v990_v47, %v975_v44 }
 0x16f   :  { %997 = vst.msk [vmem:[%s1749_s6 + $0x8] sm:$0xff] %vm912_vm1, %v993_v48  ;;  %996 = vst.msk [vmem:[%s1749_s6] sm:$0xff] %vm912_vm1, %v992_v49 }
 0x170   :  { %998 = vst.msk [vmem:[%s1749_s6 + $0x10] sm:$0xff] %vm912_vm1, %v994_v50  ;;  %999 = vst.msk [vmem:[%s1749_s6 + $0x18] sm:$0xff] %vm912_vm1, %v995_v51 }
 0x171   :  { %1004 = vsyncpa [#allocation3], 1 }
 0x172   :  { %1005 = vsyncpa [#allocation5], 1 }

</bundles_post_ra>
